<compile_context>
chip_gen: v5e
topology: v5e:2x2
jax: 0.10.0
libtpu: 0.0.40
codegen_flags: <defaults>
</compile_context>

<pallas_src>
import jax
import jax.numpy as jnp
from jax.experimental import pallas as pl
from jax.experimental.pallas import tpu as pltpu

_LANES = 128
_C = 2 * _LANES  # 256 lanes per row: 128 samples x 2 interleaved features


def linear2x2_kernel(p_ref, x_ref, o_ref):
    """y = x @ W.T + b on feature-interleaved lane-dense slabs (VPU + XLU only).

    p_ref: (6,)     SMEM  = [w00, w01, w10, w11, b0, b1]
    x_ref: (rb, 256) VMEM = [x0, x1, x0, x1, ...] along lanes
    o_ref: (rb, 256) VMEM = [y0, y1, y0, y1, ...] along lanes
    """
    x = x_ref[...]
    c = x.shape[-1]
    # Lane rotations (XLU): x_next[j] = x[j+1], x_prev[j] = x[j-1] (mod c).
    # Positive shifts only; the wrap-around lanes are never selected below.
    x_next = pltpu.roll(x, shift=c - 1, axis=1)
    x_prev = pltpu.roll(x, shift=1, axis=1)

    w00 = p_ref[0]
    w01 = p_ref[1]
    w10 = p_ref[2]
    w11 = p_ref[3]
    b0 = p_ref[4]
    b1 = p_ref[5]

    y_even = w00 * x + w01 * x_next + b0       # valid on even lanes (feature 0)
    y_odd = w10 * x_prev + w11 * x + b1        # valid on odd lanes  (feature 1)

    lane = jax.lax.broadcasted_iota(jnp.int32, x.shape, 1)
    o_ref[...] = jnp.where(lane % 2 == 0, y_even, y_odd)


def dummy_model_forward(x, weight, bias):
    """y = x @ weight.T + bias, matching torch.nn.Linear(2, 2).

    x:      (B, 2) float32
    weight: (2, 2) float32 (PyTorch layout)
    bias:   (2,)   float32
    returns (B, 2) float32
    """
    B, in_f = x.shape
    out_f, _ = weight.shape
    assert in_f == 2 and out_f == 2, "DummyModel is Linear(2, 2)"

    # Pad the batch up to a multiple of 128 so the free row-major reshape to
    # (rows, 256) is exact.  (No-op when B is already 128-aligned.)
    Bp = pl.cdiv(B, _LANES) * _LANES
    xp = x if Bp == B else jnp.pad(x, ((0, Bp - B), (0, 0)))
    rows = Bp // _LANES
    x2 = xp.reshape(rows, _C)                  # free reshape — no transpose, no copy

    # Single flattened (6,) SMEM parameter vector (avoids 2-D SMEM padding).
    params = jnp.concatenate([weight.reshape(-1), bias.reshape(-1)]).astype(x.dtype)

    # Row-block selection:
    #   * tiny inputs -> one grid step (per-step overhead >> work);
    #   * large inputs -> ~8 steps, rb a multiple of 8 sublanes, capped at
    #     2048 rows (2 MiB block) so double-buffered in+out stays ~8 MiB.
    if rows <= 64:
        rb = rows
    else:
        rb = min(2048, ((pl.cdiv(rows, 8) + 7) // 8) * 8)
    steps = pl.cdiv(rows, rb)

    y2 = pl.pallas_call(
        linear2x2_kernel,
        out_shape=jax.ShapeDtypeStruct((rows, _C), x.dtype),
        grid=(steps,),
        in_specs=[
            # Params: 6 scalars resident in SMEM across all grid steps.
            pl.BlockSpec(memory_space=pltpu.MemorySpace.SMEM),
            # Activations: lane+sublane dense slabs along the batch axis.
            pl.BlockSpec((rb, _C), lambda i: (i, 0)),
        ],
        out_specs=pl.BlockSpec((rb, _C), lambda i: (i, 0)),
        compiler_params=pltpu.CompilerParams(
            # Batch loop is embarrassingly parallel -> shard across v7x's two
            # TensorCores when there is more than one step; single-step tiny
            # inputs are left alone (splitting them is a net loss).
            dimension_semantics=("parallel",) if steps > 1 else ("arbitrary",),
        ),
    )(params, x2)

    y = y2.reshape(Bp, 2)                      # free reshape back
    return y if Bp == B else y[:B]


if __name__ == "__main__":
    key = jax.random.PRNGKey(0)
    k_x, k_w, k_b = jax.random.split(key, 3)

    in_features, out_features = 2, 2
    batch = 256  # small; 128-aligned so the reshape path is fully zero-copy

    # Deterministic init mimicking torch.nn.Linear's uniform range.
    bound = 1.0 / jnp.sqrt(jnp.float32(in_features))
    weight = jax.random.uniform(
        k_w, (out_features, in_features), jnp.float32, -bound, bound)
    bias = jax.random.uniform(
        k_b, (out_features,), jnp.float32, -bound, bound)

    x = jax.random.normal(k_x, (batch, in_features), jnp.float32)

    y = dummy_model_forward(x, weight, bias)
    jax.block_until_ready(y)

    # Cross-check against plain JAX reference (torch.nn.Linear semantics).
    y_ref = x @ weight.T + bias
    assert y.shape == (batch, out_features)
    assert jnp.allclose(y, y_ref, atol=1e-5, rtol=1e-5), "mismatch vs reference"

    print("KERNEL_OK")
</pallas_src>

<mosaic_0001>
module attributes {stable_mosaic.version = 11 : i64} {
  func.func @linear2x2_kernel(%arg0: i32, %arg1: memref<6xf32, #tpu.memory_space<smem>>, %arg2: memref<2x256xf32, #tpu.memory_space<vmem>>, %arg3: memref<2x256xf32, #tpu.memory_space<vmem>>) attributes {dimension_semantics = [#tpu.dimension_semantics<arbitrary>], iteration_bounds = array<i64: 1>, scalar_prefetch = 0 : i64, scratch_operands = 0 : i64, tpu.core_type = #tpu.core_type<tc>, window_params = [{transform_indices = @transform_0, window_bounds = array<i64: 6>}, {transform_indices = @transform_1, window_bounds = array<i64: 2, 256>}, {transform_indices = @transform_2, window_bounds = array<i64: 2, 256>}]} {
    %c0 = arith.constant 0 : index
    %c0_0 = arith.constant 0 : index
    %0 = vector.load %arg2[%c0, %c0_0] : memref<2x256xf32, #tpu.memory_space<vmem>>, vector<2x256xf32>
    %c255_i32 = arith.constant 255 : i32
    %1 = tpu.dynamic_rotate %0 by %c255_i32 dim 1 : vector<2x256xf32>, i32 -> vector<2x256xf32>
    %c1_i32 = arith.constant 1 : i32
    %2 = tpu.dynamic_rotate %0 by %c1_i32 dim 1 : vector<2x256xf32>, i32 -> vector<2x256xf32>
    %c0_1 = arith.constant 0 : index
    %3 = memref.load %arg1[%c0_1] : memref<6xf32, #tpu.memory_space<smem>>
    %c1 = arith.constant 1 : index
    %4 = memref.load %arg1[%c1] : memref<6xf32, #tpu.memory_space<smem>>
    %c2 = arith.constant 2 : index
    %5 = memref.load %arg1[%c2] : memref<6xf32, #tpu.memory_space<smem>>
    %c3 = arith.constant 3 : index
    %6 = memref.load %arg1[%c3] : memref<6xf32, #tpu.memory_space<smem>>
    %c4 = arith.constant 4 : index
    %7 = memref.load %arg1[%c4] : memref<6xf32, #tpu.memory_space<smem>>
    %c5 = arith.constant 5 : index
    %8 = memref.load %arg1[%c5] : memref<6xf32, #tpu.memory_space<smem>>
    %9 = vector.broadcast %3 : f32 to vector<2x256xf32>
    %10 = arith.mulf %9, %0 : vector<2x256xf32>
    %11 = vector.broadcast %4 : f32 to vector<2x256xf32>
    %12 = arith.mulf %11, %1 : vector<2x256xf32>
    %13 = arith.addf %10, %12 : vector<2x256xf32>
    %14 = vector.broadcast %7 : f32 to vector<2x256xf32>
    %15 = arith.addf %13, %14 : vector<2x256xf32>
    %16 = vector.broadcast %5 : f32 to vector<2x256xf32>
    %17 = arith.mulf %16, %2 : vector<2x256xf32>
    %18 = vector.broadcast %6 : f32 to vector<2x256xf32>
    %19 = arith.mulf %18, %0 : vector<2x256xf32>
    %20 = arith.addf %17, %19 : vector<2x256xf32>
    %21 = vector.broadcast %8 : f32 to vector<2x256xf32>
    %22 = arith.addf %20, %21 : vector<2x256xf32>
    %23 = tpu.iota {dimensions = array<i32: 1>} : vector<2x256xi32>
    %c2_i32 = arith.constant 2 : i32
    %c0_i32 = arith.constant 0 : i32
    %24 = arith.cmpi eq, %c2_i32, %c0_i32 : i32
    %c1_i32_2 = arith.constant 1 : i32
    %25 = arith.select %24, %c1_i32_2, %c2_i32 : i32
    %26 = vector.broadcast %25 : i32 to vector<2x256xi32>
    %27 = arith.remsi %23, %26 : vector<2x256xi32>
    %c0_i32_3 = arith.constant 0 : i32
    %28 = vector.broadcast %c0_i32_3 : i32 to vector<2x256xi32>
    %29 = arith.cmpi ne, %27, %28 : vector<2x256xi32>
    %c0_i32_4 = arith.constant 0 : i32
    %30 = vector.broadcast %c0_i32_4 : i32 to vector<2x256xi32>
    %31 = arith.cmpi slt, %27, %30 : vector<2x256xi32>
    %c0_i32_5 = arith.constant 0 : i32
    %32 = arith.cmpi slt, %25, %c0_i32_5 : i32
    %33 = vector.broadcast %32 : i1 to vector<2x256xi1>
    %34 = vector.broadcast %33 : vector<2x256xi1> to vector<2x256xi1>
    %35 = arith.xori %31, %34 : vector<2x256xi1>
    %36 = arith.andi %35, %29 : vector<2x256xi1>
    %37 = vector.broadcast %25 : i32 to vector<2x256xi32>
    %38 = arith.addi %27, %37 : vector<2x256xi32>
    %39 = arith.select %36, %38, %27 : vector<2x256xi1>, vector<2x256xi32>
    %c0_i32_6 = arith.constant 0 : i32
    %40 = vector.broadcast %c0_i32_6 : i32 to vector<2x256xi32>
    %41 = arith.cmpi eq, %39, %40 : vector<2x256xi32>
    %42 = arith.select %41, %15, %22 : vector<2x256xi1>, vector<2x256xf32>
    %c0_7 = arith.constant 0 : index
    %c0_8 = arith.constant 0 : index
    %43 = vector.load %arg3[%c0_7, %c0_8] : memref<2x256xf32, #tpu.memory_space<vmem>>, vector<2x256xf32>
    tpu.vector_store %arg3[%c0_7, %c0_8], %42 {strides = array<i32>} : memref<2x256xf32, #tpu.memory_space<vmem>>, vector<2x256xf32>,
    return
  }
  func.func @transform_0(%arg0: i32) -> i32 {
    %c0_i32 = arith.constant 0 : i32
    %c0_i32_0 = arith.constant 0 : i32
    return %c0_i32 : i32
  }
  func.func @transform_1(%arg0: i32) -> (i32, i32) {
    %c0_i32 = arith.constant 0 : i32
    %c0_i32_0 = arith.constant 0 : i32
    return %arg0, %c0_i32 : i32, i32
  }
  func.func @transform_2(%arg0: i32) -> (i32, i32) {
    %c0_i32 = arith.constant 0 : i32
    %c0_i32_0 = arith.constant 0 : i32
    return %arg0, %c0_i32 : i32, i32
  }
}

</mosaic_0001>

<bundles_post_ra>
// kernel: tpu_custom_call.1
= control target key start
LH: loop header
LB: loop body
LE: loop exit
PB: predicated region body
PF: predicated region fallthrough
CT: control target
= control target key end

     0   :  { %7 = vsyncpa [#allocation5], 0  ;;  %s269_s0 = inlined_call_operand.hbm [shape: f32[6], index: 0, kind: input, shape index: {}]   ;;  %s270_s1 = inlined_call_operand.hbm [shape: f32[2,256], index: 1, kind: input, shape index: {}]   ;;  %s271_s2 = inlined_call_operand.hbm [shape: f32[2,256], index: 2, kind: output, shape index: {}]  }
   0x1   :  { %8 = vsyncpa [#allocation3], 0 }
   0x2   :  { %9 = vsyncpa [#allocation4], 0  ;;  %s15_s11 = sshll.u32 %s269_s0, 4  ;;  %s24_s14 = sshll.u32 %s270_s1, 4  ;;  %s16_s11 = int_to_ptr.hbm [resolvable:$true] %s15_s11  ;;  %s25_s14 = int_to_ptr.hbm [resolvable:$true] %s24_s14 }
   0x3   :  { %s238_s15 = smov [#allocation2]   ;;  %s239_s16 = smov [#allocation6]  }
   0x4   :  { %18 = dma.hbm_to_smem %s16_s11, 16, %s238_s15, [#allocation5]  }
   0x5   :  { %s26_s17 = sshll.u32 %s239_s16, 4  ;;  %s27_s17 = int_to_ptr.vmem [resolvable:$true] %s26_s17 }
   0x6   :  { %29 = dma.hbm_to_vmem [thread:$0]  %s25_s14, 64, %s27_s17, [#allocation3]  }
   0x7   :  { %232 = dma.done.wait [#allocation5], 16  }
   0x8   :  { %233 = vsyncadd [#allocation5], 4294967280 }
   0x9   :  { %234 = dma.done.wait [#allocation3], 64  }
   0xa   :  { %235 = vsyncadd [#allocation3], 4294967232 }
   0xb   :  { %38 = sfence }
   0xc   :  { %v39_v0 = vld [vmem:[#allocation6] sm:$0xf]  ;;  %s164_s0 = sld [smem:[#allocation2 + $0x3]]  ;;  %s240_s18 = smov 127   ;;  %v50_v7 = vlaneseq  ;;  %vm81_vm1 = vcmask 1041408  }
   0xd   :  { %41 = vst [vmem:[#allocation1] ss:$4 sm:$0xff] %v39_v0  ;;  %s241_s1 = smov 1   ;;  %s162_s19 = sld [smem:[#allocation2 + $0x1]] }
   0xe   :  { %s67_s20 = sld [smem:[#allocation2]]  ;;  %v51_v9 = vand.u32 127, %v50_v7  ;;  %s242_s24 = smov [#allocation7]  }
   0xf   :  { %s165_s21 = sld [smem:[#allocation2 + $0x4]]  ;;  %s149_s25 = sshll.u32 %s242_s24, 4  ;;  %s150_s25 = int_to_ptr.vmem [resolvable:$true] %s149_s25 }
  0x10   :  { %vm52_vm0 = vcmp.lt.s32.totalorder %v51_v9, 127  ;;  %s163_s22 = sld [smem:[#allocation2 + $0x2]]  ;;  %vm64_vm2 = vcmp.lt.s32.totalorder %v51_v9, 1  ;;  %v103_v27 = vadd.s32 128, %v51_v9  ;;  %v108_v35 = vand.u32 1, %v51_v9  ;;  %s151_s28 = sshll.u32 %s271_s2, 4  ;;  %s152_s28 = int_to_ptr.hbm [resolvable:$true] %s151_s28 }
  0x11   :  { %s166_s23 = sld [smem:[#allocation2 + $0x5]] }
  0x12   :  { %v90_v3 = vstv %s164_s0  ;;  %v115_v33 = vand.u32 1, %v103_v27  ;;  %vm128_vm4 = vcmp.eq.s32.totalorder %v108_v35, 0 }
  0x13   :  { %v91_v4 = vmul.f32 %v90_v3, %v39_v0  ;;  %v75_v10 = vstv %s162_s19 }
  0x14   :  { %v42_v1 = vld.sshfl [vmem:[#allocation1] sm:$0xff pattern:$0x73625140]  ;;  %v43_v2 = vld.sshfl [vmem:[#allocation1 + $0x8] sm:$0xff pattern:$0x73625140]  ;;  %v73_v13 = vstv %s67_s20 }
  0x15   :  { %46 = vrot.lane.b32.xlu0 %v42_v1, %s240_s18  ;;  %55 = vst [vmem:[#allocation1] ss:$4 sm:$0xff] %v39_v0  ;;  %v74_v17 = vmul.f32 %v73_v13, %v39_v0  ;;  %v85_v21 = vstv %s165_s21  ;;  %vm129_vm3 = vcmp.eq.s32.totalorder %v115_v33, 0 }
  0x16   :  { %v87_v22 = vstv %s163_s22 }
  0x17   :  { %v100_v36 = vstv %s166_s23 }
  0x1c   :  { %v56_v5 = vld.sshfl [vmem:[#allocation1] sm:$0xff pattern:$0x73625140]  ;;  %v57_v6 = vld.sshfl [vmem:[#allocation1 + $0x8] sm:$0xff pattern:$0x73625140] }
  0x1d   :  { %48 = vrot.lane.b32.xlu0 %v43_v2, %s240_s18  ;;  %60 = vrot.lane.b32.xlu1 %v56_v5, %s241_s1  ;;  %93 = vst [vmem:[#allocation1] ss:$4 sm:$0xff] %v91_v4 }
  0x24   :  { %v94_v23 = vld.sshfl [vmem:[#allocation1] sm:$0xff pattern:$0x73625140]  ;;  %v95_v26 = vld.sshfl [vmem:[#allocation1 + $0x8] sm:$0xff pattern:$0x73625140] }
  0x25   :  { %62 = vrot.lane.b32.xlu1 %v57_v6, %s241_s1 }
  0x87   :  { %v47_v8 = vpop.permute.xlu0 %46 }
  0x8f   :  { %v49_v11 = vpop.permute.xlu0 %48  ;;  %v61_v12 = vpop.permute.xlu1 %60 }
  0x90   :  { %v53_v14 = vsel %vm52_vm0, %v47_v8, %v49_v11  ;;  %v54_v15 = vsel %vm52_vm0, %v49_v11, %v47_v8 }
  0x91   :  { %v77_v16 = vmul.f32 %v75_v10, %v54_v15  ;;  %v76_v18 = vmul.f32 %v75_v10, %v53_v14 }
  0x93   :  { %v80_v19 = vrot.slane %v77_v16, 6 }
  0x95   :  { %v82_v20 = vsel %vm81_vm1, %v76_v18, %v80_v19 }
  0x96   :  { %v84_v24 = vadd.f32 %v82_v20, %v74_v17 }
  0x97   :  { %v63_v25 = vpop.permute.xlu1 %62 }
  0x98   :  { %v65_v28 = vsel %vm64_vm2, %v61_v12, %v63_v25  ;;  %v66_v29 = vsel %vm64_vm2, %v63_v25, %v61_v12  ;;  %v86_v30 = vadd.f32 %v85_v21, %v84_v24 }
  0x99   :  { %v89_v31 = vmul.f32 %v87_v22, %v65_v28  ;;  %v88_v32 = vmul.f32 %v87_v22, %v66_v29 }
  0x9a   :  { %131 = vst [vmem:[#allocation1] ss:$4 sm:$0xff] %v86_v30 }
  0x9b   :  { %v99_v34 = vadd.f32 %v95_v26, %v89_v31  ;;  %v98_v37 = vadd.f32 %v94_v23, %v88_v32 }
  0x9d   :  { %v102_v38 = vadd.f32 %v100_v36, %v99_v34  ;;  %v101_v41 = vadd.f32 %v100_v36, %v98_v37 }
  0xa1   :  { %v132_v39 = vld.sshfl [vmem:[#allocation1] sm:$0xff pattern:$0x73625140]  ;;  %v133_v40 = vld.sshfl [vmem:[#allocation1 + $0x8] sm:$0xff pattern:$0x73625140] }
  0xa2   :  { %v137_v42 = vsel %vm129_vm3, %v133_v40, %v102_v38  ;;  %v136_v44 = vsel %vm128_vm4, %v132_v39, %v101_v41 }
  0xa3   :  { %v140_v43 = vrot.slane %v137_v42, 6 }
  0xa5   :  { %v141_v45 = vsel %vm81_vm1, %v136_v44, %v140_v43 }
  0xa6   :  { %143 = vst [vmem:[#allocation7] sm:$0xf] %v141_v45 }
  0xa7   :  { %154 = dma.vmem_to_hbm [thread:$0]  %s150_s25, 64, %s152_s28, [#allocation4]  }
  0xa8   :  { %236 = dma.done.wait [#allocation4], 64  }
  0xa9   :  { %237 = vsyncadd [#allocation4], 4294967232 }
  0xaa   :  { %159 = vsyncpa [#allocation3], 1 }
  0xab   :  { %160 = vsyncpa [#allocation4], 1 }
  0xac   :  { %161 = vsyncpa [#allocation5], 1 }

</bundles_post_ra>
